<compile_context>
chip_gen: v5e
topology: v5e:2x2
jax: 0.10.0
libtpu: 0.0.40
codegen_flags: <defaults>
</compile_context>

<pallas_src>
from functools import partial

import jax
import jax.numpy as jnp
from jax.experimental import pallas as pl
from jax.experimental.pallas import tpu as pltpu


def _round_up(v, m):
    return ((v + m - 1) // m) * m


def _vmem_budget_bytes():
    """Usable scoped-VMEM cap with headroom, per chip generation."""
    phys = 64 << 20  # conservative fallback (v7x per-TC VMEM)
    try:
        phys = int(pltpu.get_tpu_info().vmem_capacity_bytes)
    except Exception:
        pass
    # Leave ~16 MiB headroom below physical; never exceed 112 MiB even on
    # 128 MiB chips, never go below 32 MiB.
    return max(min(phys - (16 << 20), 112 << 20), 32 << 20)


# ---------------------------------------------------------------------------
# Kernel 1: feature transform  XW = X @ W  (bf16 in, f32 acc, bf16 out)
#   grid = (node-row tiles,)
# ---------------------------------------------------------------------------
def _xw_kernel(x_ref, w_ref, o_ref):
    o_ref[...] = jnp.dot(x_ref[...], w_ref[...],
                         preferred_element_type=jnp.float32).astype(o_ref.dtype)


def _xw_matmul(x_p, w_p, *, tile, vmem_cap):
    np_, fp = x_p.shape
    hp = w_p.shape[1]
    n_row = np_ // tile

    flops = 2 * np_ * fp * hp
    bytes_accessed = np_ * fp * 2 + fp * hp * 2 + np_ * hp * 2

    vmem_bytes = 2 * (tile * fp * 2) + 2 * (fp * hp * 2) + 2 * (tile * hp * 2)
    vmem_limit = int(min(max(vmem_bytes + (4 << 20), 16 << 20), vmem_cap))

    grid_spec = pltpu.PrefetchScalarGridSpec(
        num_scalar_prefetch=0,
        grid=(n_row,),
        in_specs=[
            pl.BlockSpec((tile, fp), lambda i: (i, 0)),   # X row tile
            pl.BlockSpec((fp, hp),   lambda i: (0, 0)),   # W (constant block)
        ],
        out_specs=pl.BlockSpec((tile, hp), lambda i: (i, 0)),
    )

    return pl.pallas_call(
        _xw_kernel,
        out_shape=jax.ShapeDtypeStruct((np_, hp), jnp.bfloat16),
        grid_spec=grid_spec,
        compiler_params=pltpu.CompilerParams(
            dimension_semantics=("parallel",),
            vmem_limit_bytes=vmem_limit),
        cost_estimate=pl.CostEstimate(flops=int(flops), transcendentals=0,
                                      bytes_accessed=int(bytes_accessed)),
    )(x_p, w_p)


# ---------------------------------------------------------------------------
# Kernel 2: aggregation  out = A_hat @ XW + b  (+ fused ReLU / dropout)
#   grid = (node-row tiles, A-column reduction tiles)
# ---------------------------------------------------------------------------
def _agg_kernel(seed_ref, a_ref, xw_ref, b_ref, o_ref, acc_ref, *,
                tk, xw_resident, apply_relu, dropout_p, training):
    k = pl.program_id(1)

    @pl.when(k == 0)
    def _():
        acc_ref[...] = jnp.zeros_like(acc_ref)

    if xw_resident:
        start = pl.multiple_of(k * tk, tk)
        xw_blk = xw_ref[pl.ds(start, tk), :]
    else:
        xw_blk = xw_ref[...]

    # (tile, tk) @ (tk, hp) on the MXU; bf16 in, f32 accumulation.
    acc_ref[...] += jnp.dot(a_ref[...], xw_blk,
                            preferred_element_type=jnp.float32)

    @pl.when(k == pl.num_programs(1) - 1)
    def _():
        h = acc_ref[...] + b_ref[...]
        if apply_relu:
            h = jnp.maximum(h, 0.0)
        if training and dropout_p > 0.0:
            # Per-row-tile seed offset so tiles get independent masks.
            pltpu.prng_seed(seed_ref[0] + pl.program_id(0))
            bits = pltpu.bitcast(pltpu.prng_random_bits(h.shape), jnp.uint32)
            thr = jnp.uint32(min(int(dropout_p * 4294967296.0), 4294967295))
            h = jnp.where(bits >= thr, h * (1.0 / (1.0 - dropout_p)), 0.0)
        o_ref[...] = h.astype(o_ref.dtype)


def _aggregate(a_p, xw_p, b_p, *, out_dtype, apply_relu, dropout_p, training,
               seed, tile, vmem_cap):
    np_ = a_p.shape[0]
    hp = xw_p.shape[1]
    n_row = np_ // tile
    n_k = np_ // tile
    out_bytes = jnp.dtype(out_dtype).itemsize

    # VMEM usage: double-buffered A tile + output tile, f32 accumulator, bias.
    base_vmem = (2 * tile * tile * 2 + 2 * tile * hp * out_bytes
                 + tile * hp * 4 + 2 * hp * 4)
    headroom = 8 << 20
    # Resident XW is a constant block (default double-buffered -> 2x bytes).
    xw_resident_vmem = 2 * np_ * hp * 2
    xw_resident = (base_vmem + xw_resident_vmem + headroom) <= vmem_cap

    if xw_resident:
        xw_spec = pl.BlockSpec((np_, hp), lambda i, k, s: (0, 0))   # DMA'd once
        vmem_bytes = base_vmem + xw_resident_vmem
        xw_hbm_bytes = np_ * hp * 2
    else:
        xw_spec = pl.BlockSpec((tile, hp), lambda i, k, s: (k, 0))  # streamed
        vmem_bytes = base_vmem + 2 * tile * hp * 2
        xw_hbm_bytes = n_row * np_ * hp * 2

    vmem_limit = int(min(max(vmem_bytes + headroom, 16 << 20), vmem_cap))

    kernel = partial(_agg_kernel, tk=tile, xw_resident=xw_resident,
                     apply_relu=bool(apply_relu),
                     dropout_p=float(dropout_p), training=bool(training))

    flops = 2 * np_ * np_ * hp
    bytes_accessed = (np_ * np_ * 2 + xw_hbm_bytes + hp * 4
                      + np_ * hp * out_bytes)

    grid_spec = pltpu.PrefetchScalarGridSpec(
        num_scalar_prefetch=1,
        grid=(n_row, n_k),
        in_specs=[
            pl.BlockSpec((tile, tile), lambda i, k, s: (i, k)),   # A_hat tile
            xw_spec,                                              # XW
            pl.BlockSpec((1, hp), lambda i, k, s: (0, 0)),        # bias
        ],
        out_specs=pl.BlockSpec((tile, hp), lambda i, k, s: (i, 0)),
        scratch_shapes=[pltpu.VMEM((tile, hp), jnp.float32)],
    )

    seed_arr = jnp.array([seed], dtype=jnp.int32)

    return pl.pallas_call(
        kernel,
        out_shape=jax.ShapeDtypeStruct((np_, hp), out_dtype),
        grid_spec=grid_spec,
        compiler_params=pltpu.CompilerParams(
            dimension_semantics=("parallel", "arbitrary"),
            vmem_limit_bytes=vmem_limit),
        cost_estimate=pl.CostEstimate(flops=int(flops), transcendentals=0,
                                      bytes_accessed=int(bytes_accessed)),
    )(seed_arr, a_p, xw_p, b_p)


# ---------------------------------------------------------------------------
# Glue: normalized adjacency, one-time padding/casting, parameters, forward.
# ---------------------------------------------------------------------------
def normalized_adjacency(edge_index, num_nodes):
    """Dense symmetrically-normalized adjacency (PyG gcn_norm, self-loops)."""
    src, dst = edge_index[0], edge_index[1]
    a = jnp.zeros((num_nodes, num_nodes), jnp.float32).at[dst, src].add(1.0)
    a = a + jnp.eye(num_nodes, dtype=jnp.float32)
    deg = a.sum(axis=1)
    dinv = jnp.where(deg > 0, 1.0 / jnp.sqrt(deg), 0.0)
    return dinv[:, None] * a * dinv[None, :]


def prepare_graph(a_hat, x, *, tile=512):
    """Pad/cast A_hat and X to bf16 tile-aligned shapes ONCE (cache result)."""
    n, f = x.shape
    tile = max(128, min(int(tile), _round_up(n, 128)))
    np_ = _round_up(n, tile)
    fp = _round_up(f, 128)
    a_p = jnp.zeros((np_, np_), jnp.bfloat16).at[:n, :n].set(
        a_hat.astype(jnp.bfloat16))
    x_p = jnp.zeros((np_, fp), jnp.bfloat16).at[:n, :f].set(
        x.astype(jnp.bfloat16))
    return a_p, x_p, tile


def prepare_params(params):
    """Pad/cast weights ONCE to lane-dense (multiple-of-128) channel dims."""
    w1, b1, w2, b2 = params
    f, h = w1.shape
    c = w2.shape[1]
    fp, hp, cp = _round_up(f, 128), _round_up(h, 128), _round_up(c, 128)
    w1_p = jnp.zeros((fp, hp), jnp.bfloat16).at[:f, :h].set(w1.astype(jnp.bfloat16))
    b1_p = jnp.zeros((1, hp), jnp.float32).at[:, :h].set(b1.reshape(1, -1))
    w2_p = jnp.zeros((hp, cp), jnp.bfloat16).at[:h, :c].set(w2.astype(jnp.bfloat16))
    b2_p = jnp.zeros((1, cp), jnp.float32).at[:, :c].set(b2.reshape(1, -1))
    return w1_p, b1_p, w2_p, b2_p


def init_params(key, in_channels, hidden_channels, out_channels):
    k1, k2 = jax.random.split(key)

    def glorot(k, fan_in, fan_out):
        lim = jnp.sqrt(6.0 / (fan_in + fan_out))
        return jax.random.uniform(k, (fan_in, fan_out), jnp.float32, -lim, lim)

    w1 = glorot(k1, in_channels, hidden_channels)
    b1 = jnp.zeros((hidden_channels,), jnp.float32)
    w2 = glorot(k2, hidden_channels, out_channels)
    b2 = jnp.zeros((out_channels,), jnp.float32)
    return w1, b1, w2, b2


def gcn_forward(x_p, a_p, params_p, *, num_nodes, out_channels, tile,
                dropout_p=0.3, training=False, seed=0):
    """Two-layer GCN forward on pre-padded inputs (prepare_graph/prepare_params)."""
    w1_p, b1_p, w2_p, b2_p = params_p
    vmem_cap = _vmem_budget_bytes()

    # Layer 1: XW1 = X @ W1 ; H = relu(A @ XW1 + b1) ; dropout  (bf16 out)
    xw1 = _xw_matmul(x_p, w1_p, tile=tile, vmem_cap=vmem_cap)
    h = _aggregate(a_p, xw1, b1_p, out_dtype=jnp.bfloat16, apply_relu=True,
                   dropout_p=dropout_p, training=training, seed=seed,
                   tile=tile, vmem_cap=vmem_cap)

    # Layer 2: XW2 = H @ W2 ; out = A @ XW2 + b2  (f32 out)
    xw2 = _xw_matmul(h, w2_p, tile=tile, vmem_cap=vmem_cap)
    out = _aggregate(a_p, xw2, b2_p, out_dtype=jnp.float32, apply_relu=False,
                     dropout_p=0.0, training=False, seed=seed,
                     tile=tile, vmem_cap=vmem_cap)
    return out[:num_nodes, :out_channels]


# Pure-JAX reference mirroring the kernel's mixed precision (bf16 MXU inputs,
# f32 accumulation) for a tight correctness check in inference mode.
def gcn_reference(x, a_hat, params):
    w1, b1, w2, b2 = params
    a = a_hat.astype(jnp.bfloat16)

    def conv(x_in, w, b):
        xw = jnp.dot(x_in.astype(jnp.bfloat16), w.astype(jnp.bfloat16),
                     preferred_element_type=jnp.float32).astype(jnp.bfloat16)
        return jnp.dot(a, xw, preferred_element_type=jnp.float32) + b

    h = jnp.maximum(conv(x, w1, b1), 0.0).astype(jnp.bfloat16)
    return conv(h, w2, b2)


if __name__ == "__main__":
    key = jax.random.PRNGKey(0)
    num_nodes, in_channels, hidden_channels, out_channels = 16, 8, 32, 4
    n_edges = 24

    k_x, k_src, k_dst, k_params = jax.random.split(key, 4)
    x = jax.random.normal(k_x, (num_nodes, in_channels), jnp.float32)
    src = jax.random.randint(k_src, (n_edges,), 0, num_nodes)
    dst = jax.random.randint(k_dst, (n_edges,), 0, num_nodes)
    # undirected graph (typical PyG usage)
    edge_index = jnp.stack([jnp.concatenate([src, dst]),
                            jnp.concatenate([dst, src])]).astype(jnp.int32)

    params = init_params(k_params, in_channels, hidden_channels, out_channels)

    # One-time graph/parameter preparation (hoisted out of the per-call path).
    a_hat = normalized_adjacency(edge_index, num_nodes)
    a_p, x_p, tile = prepare_graph(a_hat, x, tile=512)
    params_p = prepare_params(params)

    # Inference mode (dropout is identity, matching model.eval()).
    out = gcn_forward(x_p, a_p, params_p, num_nodes=num_nodes,
                      out_channels=out_channels, tile=tile, training=False)
    out = jax.block_until_ready(out)

    ref = gcn_reference(x, a_hat, params)
    assert out.shape == (num_nodes, out_channels)
    assert jnp.allclose(out, ref, atol=1e-3, rtol=1e-3), "mismatch vs JAX reference"

    print("KERNEL_OK")
</pallas_src>

<mosaic_0001>
module attributes {stable_mosaic.version = 11 : i64} {
  func.func @_xw_kernel(%arg0: i32, %arg1: memref<128x128xbf16, #tpu.memory_space<vmem>>, %arg2: memref<128x128xbf16, #tpu.memory_space<vmem>>, %arg3: memref<128x128xbf16, #tpu.memory_space<vmem>>) attributes {dimension_semantics = [#tpu.dimension_semantics<parallel>], iteration_bounds = array<i64: 1>, scalar_prefetch = 0 : i64, scratch_operands = 0 : i64, tpu.core_type = #tpu.core_type<tc>, window_params = [{transform_indices = @transform_0, window_bounds = array<i64: 128, 128>}, {pipeline_mode = #tpu.pipeline_mode<synchronous>, transform_indices = @transform_1, window_bounds = array<i64: 128, 128>}, {transform_indices = @transform_2, window_bounds = array<i64: 128, 128>}]} {
    %c0 = arith.constant 0 : index
    %c0_0 = arith.constant 0 : index
    %0 = vector.load %arg1[%c0, %c0_0] : memref<128x128xbf16, #tpu.memory_space<vmem>>, vector<128x128xbf16>
    %c0_1 = arith.constant 0 : index
    %c0_2 = arith.constant 0 : index
    %1 = vector.load %arg2[%c0_1, %c0_2] : memref<128x128xbf16, #tpu.memory_space<vmem>>, vector<128x128xbf16>
    %cst = arith.constant dense<0.000000e+00> : vector<128x128xf32>
    %2 = tpu.matmul %0, %1, %cst {dimension_numbers = #tpu.dot_dimension_numbers<[1], [0], [0], [1], [0, 0, 1, 1], [], []>} : vector<128x128xbf16>, vector<128x128xbf16>, vector<128x128xf32> -> vector<128x128xf32>
    %3 = arith.truncf %2 : vector<128x128xf32> to vector<128x128xbf16>
    %c0_3 = arith.constant 0 : index
    %c0_4 = arith.constant 0 : index
    %4 = vector.load %arg3[%c0_3, %c0_4] : memref<128x128xbf16, #tpu.memory_space<vmem>>, vector<128x128xbf16>
    tpu.vector_store %arg3[%c0_3, %c0_4], %3 {strides = array<i32>} : memref<128x128xbf16, #tpu.memory_space<vmem>>, vector<128x128xbf16>,
    return
  }
  func.func @transform_0(%arg0: i32) -> (i32, i32) {
    %c0_i32 = arith.constant 0 : i32
    %c0_i32_0 = arith.constant 0 : i32
    return %arg0, %c0_i32 : i32, i32
  }
  func.func @transform_1(%arg0: i32) -> (i32, i32) {
    %c0_i32 = arith.constant 0 : i32
    %c0_i32_0 = arith.constant 0 : i32
    %c0_i32_1 = arith.constant 0 : i32
    return %c0_i32, %c0_i32_0 : i32, i32
  }
  func.func @transform_2(%arg0: i32) -> (i32, i32) {
    %c0_i32 = arith.constant 0 : i32
    %c0_i32_0 = arith.constant 0 : i32
    return %arg0, %c0_i32 : i32, i32
  }
}

</mosaic_0001>

<bundles_post_ra>
// kernel: tpu_custom_call.1
= control target key start
LH: loop header
LB: loop body
LE: loop exit
PB: predicated region body
PF: predicated region fallthrough
CT: control target
= control target key end

     0   :  { %7 = vsyncpa [#allocation3], 0  ;;  %s545_s0 = inlined_call_operand.hbm [shape: bf16[128,128], index: 0, kind: input, shape index: {}]   ;;  %s546_s1 = inlined_call_operand.hbm [shape: bf16[128,128], index: 1, kind: input, shape index: {}]   ;;  %s547_s2 = inlined_call_operand.hbm [shape: bf16[128,128], index: 2, kind: output, shape index: {}]  }
   0x1   :  { %8 = vsyncpa [#allocation6], 0 }
   0x2   :  { %9 = vsyncpa [#allocation4], 0  ;;  %s14_s11 = sshll.u32 %s545_s0, 4  ;;  %s507_s12 = smov [#allocation2]   ;;  %s15_s11 = int_to_ptr.hbm [resolvable:$true] %s14_s11 }
   0x3   :  { %s16_s13 = sshll.u32 %s507_s12, 4  ;;  %s27_s16 = sshll.u32 %s546_s1, 4  ;;  %s17_s13 = int_to_ptr.vmem [resolvable:$true] %s16_s13  ;;  %s28_s16 = int_to_ptr.hbm [resolvable:$true] %s27_s16 }
   0x4   :  { %s508_s17 = smov 64   ;;  %s509_s18 = smov 4  }
   0x5   :  { %22 = dma.hbm_to_vmem [thread:$0]  %s15_s11, 1024, %s17_s13, [#allocation3], %s508_s17, %s508_s17, %s509_s18  }
   0x6   :  { %s510_s19 = smov [#allocation5]  }
   0x7   :  { %s29_s20 = sshll.u32 %s510_s19, 4  ;;  %s30_s20 = int_to_ptr.vmem [resolvable:$true] %s29_s20 }
   0x8   :  { %35 = dma.hbm_to_vmem [thread:$0]  %s28_s16, 1024, %s30_s20, [#allocation6], %s508_s17, %s508_s17, %s509_s18  }
   0x9   :  { %501 = dma.done.wait [#allocation3], 1024  }
   0xa   :  { %502 = vsyncadd [#allocation3], 4294966272 }
   0xb   :  { %503 = dma.done.wait [#allocation6], 1024  }
   0xc   :  { %504 = vsyncadd [#allocation6], 4294966272  ;;  %v352_v0 = vld [vmem:[#allocation5 + $0x38] sm:$0xff]  ;;  %v351_v1 = vld [vmem:[#allocation5 + $0x30] sm:$0xff]  ;;  %s511_s0 = smov [#allocation7]   ;;  %s259_s23 = sshll.u32 %s547_s2, 4  ;;  %s260_s23 = int_to_ptr.hbm [resolvable:$true] %s259_s23 }
   0xd   :  { %172 = vmatpush.bf16.msra.mxu0 %v352_v0  ;;  %400 = vmatpush.bf16.msra.mxu1 %v352_v0  ;;  %v350_v2 = vld [vmem:[#allocation5 + $0x28] sm:$0xff]  ;;  %v349_v3 = vld [vmem:[#allocation5 + $0x20] sm:$0xff]  ;;  %v348_v4 = vld [vmem:[#allocation5 + $0x18] sm:$0xff]  ;;  %s257_s1 = sshll.u32 %s511_s0, 4  ;;  %s258_s1 = int_to_ptr.vmem [resolvable:$true] %s257_s1 }
   0xe   :  { %401 = vmatpush.bf16.msra.mxu2 %v352_v0  ;;  %402 = vmatpush.bf16.msra.mxu3 %v352_v0  ;;  %v347_v5 = vld [vmem:[#allocation5 + $0x10] sm:$0xff]  ;;  %v346_v6 = vld [vmem:[#allocation5 + $0x8] sm:$0xff]  ;;  %v345_v7 = vld [vmem:[#allocation5] sm:$0xff] }
   0xf   :  { %v337_v8 = vld [vmem:[#allocation2] sm:$0xff]  ;;  %v339_v9 = vld [vmem:[#allocation2 + $0x10] sm:$0xff]  ;;  %v338_v12 = vld [vmem:[#allocation2 + $0x8] sm:$0xff] }
  0x10   :  { %v341_v10 = vld [vmem:[#allocation2 + $0x20] sm:$0xff]  ;;  %v343_v11 = vld [vmem:[#allocation2 + $0x30] sm:$0xff]  ;;  %v340_v13 = vld [vmem:[#allocation2 + $0x18] sm:$0xff] }
  0x11   :  { %173 = vmatpush.bf16.msra.mxu0 %v351_v1  ;;  %403 = vmatpush.bf16.msra.mxu1 %v351_v1  ;;  %v342_v14 = vld [vmem:[#allocation2 + $0x28] sm:$0xff]  ;;  %v344_v15 = vld [vmem:[#allocation2 + $0x38] sm:$0xff] }
  0x12   :  { %404 = vmatpush.bf16.msra.mxu2 %v351_v1  ;;  %405 = vmatpush.bf16.msra.mxu3 %v351_v1 }
  0x15   :  { %174 = vmatpush.bf16.msra.mxu0 %v350_v2  ;;  %406 = vmatpush.bf16.msra.mxu1 %v350_v2 }
  0x16   :  { %407 = vmatpush.bf16.msra.mxu2 %v350_v2  ;;  %408 = vmatpush.bf16.msra.mxu3 %v350_v2 }
  0x19   :  { %175 = vmatpush.bf16.msra.mxu0 %v349_v3  ;;  %409 = vmatpush.bf16.msra.mxu1 %v349_v3 }
  0x1a   :  { %410 = vmatpush.bf16.msra.mxu2 %v349_v3  ;;  %411 = vmatpush.bf16.msra.mxu3 %v349_v3 }
  0x1d   :  { %176 = vmatpush.bf16.msra.mxu0 %v348_v4  ;;  %412 = vmatpush.bf16.msra.mxu1 %v348_v4 }
  0x1e   :  { %413 = vmatpush.bf16.msra.mxu2 %v348_v4  ;;  %414 = vmatpush.bf16.msra.mxu3 %v348_v4 }
  0x21   :  { %177 = vmatpush.bf16.msra.mxu0 %v347_v5  ;;  %415 = vmatpush.bf16.msra.mxu1 %v347_v5 }
  0x22   :  { %416 = vmatpush.bf16.msra.mxu2 %v347_v5  ;;  %417 = vmatpush.bf16.msra.mxu3 %v347_v5 }
  0x25   :  { %178 = vmatpush.bf16.msra.mxu0 %v346_v6  ;;  %418 = vmatpush.bf16.msra.mxu1 %v346_v6 }
  0x26   :  { %419 = vmatpush.bf16.msra.mxu2 %v346_v6  ;;  %420 = vmatpush.bf16.msra.mxu3 %v346_v6 }
  0x29   :  { %179 = vmatpush.bf16.msra.mxu0 %v345_v7  ;;  %421 = vmatpush.bf16.msra.mxu1 %v345_v7 }
  0x2a   :  { %422 = vmatpush.bf16.msra.mxu2 %v345_v7  ;;  %423 = vmatpush.bf16.msra.mxu3 %v345_v7 }
  0x2c   :  { %180 = vmatmul.bf16.vlgmr.msra.gmra.mxu0 %v337_v8  ;;  %190 = vmatmul.bf16.vlgmr.msra.gmra.mxu1 %v339_v9 }
  0x2d   :  { %200 = vmatmul.bf16.vlgmr.msra.gmra.mxu2 %v341_v10  ;;  %210 = vmatmul.bf16.vlgmr.msra.gmra.mxu3 %v343_v11 }
  0x3c   :  { %185 = vmatmul.bf16.gmra.mxu0 %v338_v12  ;;  %195 = vmatmul.bf16.gmra.mxu1 %v340_v13 }
  0x3d   :  { %205 = vmatmul.bf16.gmra.mxu2 %v342_v14  ;;  %215 = vmatmul.bf16.gmra.mxu3 %v344_v15 }
  0xa9   :  { %v181_v16 = vpop.f32.mrf.mxu0  ;;  %v191_v17 = vpop.f32.mrf.mxu1 }
  0xb0   :  { %v201_v18 = vpop.f32.mrf.mxu2  ;;  %v211_v19 = vpop.f32.mrf.mxu3 }
  0xb1   :  { %v183_v20 = vpop.f32.mrf.mxu0  ;;  %v193_v21 = vpop.f32.mrf.mxu1 }
  0xb2   :  { %v356_v22 = vpack.c.bf16 %v183_v20, %v181_v16  ;;  %v366_v23 = vpack.c.bf16 %v193_v21, %v191_v17 }
  0xb4   :  { %357 = vst [vmem:[#allocation7] sm:$0xff] %v356_v22  }
  0xb5   :  { %394 = vst [vmem:[#allocation7 + $0x10] sm:$0xff] %v366_v23  }
  0xb8   :  { %v203_v24 = vpop.f32.mrf.mxu2  ;;  %v213_v25 = vpop.f32.mrf.mxu3 }
  0xb9   :  { %v376_v26 = vpack.c.bf16 %v203_v24, %v201_v18  ;;  %v386_v27 = vpack.c.bf16 %v213_v25, %v211_v19  ;;  %v186_v28 = vpop.f32.mrf.mxu0  ;;  %v196_v29 = vpop.f32.mrf.mxu1 }
  0xbb   :  { %396 = vst [vmem:[#allocation7 + $0x20] sm:$0xff] %v376_v26  }
  0xbc   :  { %398 = vst [vmem:[#allocation7 + $0x30] sm:$0xff] %v386_v27  }
  0xc0   :  { %v206_v30 = vpop.f32.mrf.mxu2  ;;  %v216_v31 = vpop.f32.mrf.mxu3 }
  0xc1   :  { %v188_v32 = vpop.f32.mrf.mxu0  ;;  %v198_v33 = vpop.f32.mrf.mxu1 }
  0xc2   :  { %v361_v34 = vpack.c.bf16 %v188_v32, %v186_v28  ;;  %v371_v35 = vpack.c.bf16 %v198_v33, %v196_v29 }
  0xc4   :  { %393 = vst [vmem:[#allocation7 + $0x8] sm:$0xff] %v361_v34  }
  0xc5   :  { %395 = vst [vmem:[#allocation7 + $0x18] sm:$0xff] %v371_v35  }
  0xc8   :  { %v208_v36 = vpop.f32.mrf.mxu2  ;;  %v218_v37 = vpop.f32.mrf.mxu3 }
  0xc9   :  { %v381_v38 = vpack.c.bf16 %v208_v36, %v206_v30  ;;  %v391_v39 = vpack.c.bf16 %v218_v37, %v216_v31 }
  0xcb   :  { %397 = vst [vmem:[#allocation7 + $0x28] sm:$0xff] %v381_v38  }
  0xcc   :  { %399 = vst [vmem:[#allocation7 + $0x38] sm:$0xff] %v391_v39  }
  0xcd   :  { %265 = dma.vmem_to_hbm [thread:$0]  %s258_s1, 1024, %s260_s23, [#allocation4], %s508_s17, %s508_s17, %s509_s18  }
  0xce   :  { %505 = dma.done.wait [#allocation4], 1024  }
  0xcf   :  { %506 = vsyncadd [#allocation4], 4294966272 }
  0xd0   :  { %270 = vsyncpa [#allocation3], 1 }
  0xd1   :  { %271 = vsyncpa [#allocation6], 1 }
  0xd2   :  { %272 = vsyncpa [#allocation4], 1 }

</bundles_post_ra>
